<compile_context>
chip_gen: v5e
topology: v5e:2x2
jax: 0.10.0
libtpu: 0.0.40
codegen_flags: <defaults>
</compile_context>

<pallas_src>
import functools

import jax
import jax.numpy as jnp
from jax.experimental import pallas as pl
from jax.experimental.pallas import tpu as pltpu

NUM_CLASSES = 5
_LANES = 128
_MAX_TILE_ROWS = 1024      # 1024 x 128 f32 = 512 KiB/buffer; ~2.5 MiB total w/ dbl-buffering
_PAD_LOGIT = -1.0e4        # sentinel: max(x,0)=0, x*y=0, exp(-|x|) underflows -> elem == 0


def _round_up(x, m):
    return (x + m - 1) // m * m


def _ordinal_bce_kernel(pred_ref, tgt_ref, out_ref, *, c1, tile_rows, tiles_per_split):
    i = pl.program_id(1)

    @pl.when(i == 0)
    def _():
        out_ref[...] = jnp.zeros_like(out_ref)

    x = pred_ref[...].astype(jnp.float32)           # (tile_rows, 128) logits
    t = tgt_ref[...].astype(jnp.int32)              # (tile_rows, 128) int8 labels -> int32

    lane = jax.lax.broadcasted_iota(jnp.int32, x.shape, 1)
    if _LANES % c1 == 0:
        # 128 % (C-1) == 0  =>  C-1 is a power of two and the ordinal column index is a
        # pure lane function: a single AND, no row iota / flat-index chain / pad mask.
        col = lane & (c1 - 1)
    else:
        # General fallback (not hit for num_classes=5): reconstruct the flattened index.
        row = jax.lax.broadcasted_iota(jnp.int32, x.shape, 0)
        g = pl.program_id(0) * tiles_per_split + i
        col = ((g * tile_rows + row) * _LANES + lane) % c1

    y = (t > col).astype(jnp.float32)               # ordinal_targets[:, col] = (target > col)

    # Stable BCE-with-logits; min(..., 100) reproduces torch's log clamp at -100
    # (exact, since y is binary so only one log term is ever active per element).
    # Padded elements (x = -1e4, t = 0 -> y = 0) contribute exactly 0: no mask needed.
    elem = jnp.maximum(x, 0.0) - x * y + jnp.log1p(jnp.exp(-jnp.abs(x)))
    elem = jnp.minimum(elem, 100.0)

    # Lane reduce on the XLU (free slot), then a cheap VPU add into the resident
    # f32 output block; the sublane reduce + 1/total scale happen in the wrapper.
    out_ref[...] += jnp.sum(elem, axis=1, keepdims=True)


def ordinal_regression_loss(predictions, targets, num_classes=NUM_CLASSES):
    """predictions: (B, num_classes-1) float logits; targets: (B,) int class labels."""
    assert predictions.ndim == 2 and predictions.shape[1] == num_classes - 1
    B, C1 = predictions.shape
    total = B * C1
    assert total < 2**31, "flattened element count must fit int32"

    rows = pl.cdiv(total, _LANES)
    num_tiles = pl.cdiv(rows, _MAX_TILE_ROWS)
    # Two-way "parallel" split (feeds both TensorCores on v7x); only when there is
    # enough work that the at-most-one-extra padded tile is negligible.
    num_splits = 2 if num_tiles >= 4 else 1
    num_tiles = _round_up(num_tiles, num_splits)
    # Balanced tile size (multiple of 32 rows for the int8 (32,128) tile) minimizes pad.
    tile_rows = _round_up(pl.cdiv(rows, num_tiles), 32)
    rows_pad = num_tiles * tile_rows
    tiles_per_split = num_tiles // num_splits
    pad = rows_pad * _LANES - total

    # Lane-dense repack.  Predictions keep their native dtype (cast to f32 in-kernel);
    # targets are expanded to int8 (1 byte/elem).  Pad copies are skipped when aligned.
    # TODO(synk): pass compact (B,) targets and expand in-kernel (lane-repeat) to drop
    # the wrapper repeat pass entirely.
    pred_flat = predictions.reshape(-1)
    tgt_flat = jnp.repeat(targets.astype(jnp.int8), C1)
    if pad:
        pred_flat = jnp.pad(pred_flat, (0, pad), constant_values=_PAD_LOGIT)
        tgt_flat = jnp.pad(tgt_flat, (0, pad))          # label 0 -> y == 0 on padding
    pred2d = pred_flat.reshape(rows_pad, _LANES)
    tgt2d = tgt_flat.reshape(rows_pad, _LANES)

    kernel = functools.partial(
        _ordinal_bce_kernel, c1=C1, tile_rows=tile_rows, tiles_per_split=tiles_per_split
    )

    partial_sums = pl.pallas_call(
        kernel,
        out_shape=jax.ShapeDtypeStruct((num_splits * tile_rows, 1), jnp.float32),
        grid_spec=pltpu.PrefetchScalarGridSpec(
            num_scalar_prefetch=0,
            grid=(num_splits, tiles_per_split),
            in_specs=[
                pl.BlockSpec((tile_rows, _LANES),
                             lambda c, i: (c * tiles_per_split + i, 0)),
                pl.BlockSpec((tile_rows, _LANES),
                             lambda c, i: (c * tiles_per_split + i, 0)),
            ],
            # Per-split resident accumulator block: index depends only on the parallel
            # axis, so each core owns its own partial sums (no cross-core hazard).
            out_specs=pl.BlockSpec((tile_rows, 1), lambda c, i: (c, 0)),
        ),
        compiler_params=pltpu.CompilerParams(
            dimension_semantics=("parallel", "arbitrary"),
            vmem_limit_bytes=32 * 1024 * 1024,
        ),
    )(pred2d, tgt2d)

    return jnp.sum(partial_sums) * (1.0 / total)


if __name__ == "__main__":
    def reference(pred, tgt, num_classes):
        cols = jnp.arange(num_classes - 1)[None, :]
        y = (tgt[:, None] > cols).astype(jnp.float32)
        p = jax.nn.sigmoid(pred.astype(jnp.float32))
        return jnp.mean(
            -(y * jnp.maximum(jnp.log(p), -100.0)
              + (1.0 - y) * jnp.maximum(jnp.log(1.0 - p), -100.0))
        )

    key = jax.random.PRNGKey(0)
    kp, kt = jax.random.split(key)

    # Small test (batch=8); includes extreme logits to exercise torch's -100 log clamp.
    batch = 8
    predictions = jax.random.normal(kp, (batch, NUM_CLASSES - 1), dtype=jnp.float32)
    predictions = predictions.at[0, 0].set(200.0).at[1, 1].set(-300.0)
    targets = jax.random.randint(kt, (batch,), 0, NUM_CLASSES, dtype=jnp.int32)

    loss = ordinal_regression_loss(predictions, targets)
    jax.block_until_ready(loss)
    ref = reference(predictions, targets, NUM_CLASSES)
    assert jnp.allclose(loss, ref, atol=1e-5, rtol=1e-5), (loss, ref)

    # Multi-tile test: exercises the grid accumulator and sentinel padding.
    kp2, kt2 = jax.random.split(jax.random.PRNGKey(1))
    batch2 = 33000
    pred2 = jax.random.normal(kp2, (batch2, NUM_CLASSES - 1), dtype=jnp.float32)
    tgt2 = jax.random.randint(kt2, (batch2,), 0, NUM_CLASSES, dtype=jnp.int32)
    loss2 = ordinal_regression_loss(pred2, tgt2)
    jax.block_until_ready(loss2)
    ref2 = reference(pred2, tgt2, NUM_CLASSES)
    assert jnp.allclose(loss2, ref2, atol=1e-3, rtol=1e-3), (loss2, ref2)

    # Larger test: exercises the two-way "parallel" split path (>= 4 tiles).
    kp3, kt3 = jax.random.split(jax.random.PRNGKey(2))
    batch3 = 140000
    pred3 = jax.random.normal(kp3, (batch3, NUM_CLASSES - 1), dtype=jnp.float32)
    tgt3 = jax.random.randint(kt3, (batch3,), 0, NUM_CLASSES, dtype=jnp.int32)
    loss3 = ordinal_regression_loss(pred3, tgt3)
    jax.block_until_ready(loss3)
    ref3 = reference(pred3, tgt3, NUM_CLASSES)
    assert jnp.allclose(loss3, ref3, atol=1e-3, rtol=1e-3), (loss3, ref3)

    print("KERNEL_OK")
</pallas_src>

<mosaic_0001>
module attributes {stable_mosaic.version = 11 : i64} {
  func.func @_ordinal_bce_kernel(%arg0: i32, %arg1: i32, %arg2: memref<32x128xf32, #tpu.memory_space<vmem>>, %arg3: memref<32x128xi8, #tpu.memory_space<vmem>>, %arg4: memref<32x1xf32, #tpu.memory_space<vmem>>) attributes {dimension_semantics = [#tpu.dimension_semantics<parallel>, #tpu.dimension_semantics<arbitrary>], iteration_bounds = array<i64: 1, 1>, scalar_prefetch = 0 : i64, scratch_operands = 0 : i64, tpu.core_type = #tpu.core_type<tc>, window_params = [{transform_indices = @transform_0, window_bounds = array<i64: 32, 128>}, {transform_indices = @transform_1, window_bounds = array<i64: 32, 128>}, {transform_indices = @transform_2, window_bounds = array<i64: 32, 1>}]} {
    %c0_i32 = arith.constant 0 : i32
    %0 = arith.cmpi eq, %arg1, %c0_i32 : i32
    %1 = arith.extui %0 : i1 to i32
    %c0_i32_0 = arith.constant 0 : i32
    %2 = arith.cmpi ne, %1, %c0_i32_0 : i32
    scf.if %2 {
      %cst_11 = arith.constant 0.000000e+00 : f32
      %29 = vector.broadcast %cst_11 : f32 to vector<32x1xf32>
      %c0_12 = arith.constant 0 : index
      %c0_13 = arith.constant 0 : index
      %30 = vector.load %arg4[%c0_12, %c0_13] : memref<32x1xf32, #tpu.memory_space<vmem>>, vector<32x1xf32>
      tpu.vector_store %arg4[%c0_12, %c0_13], %29 {strides = array<i32>} : memref<32x1xf32, #tpu.memory_space<vmem>>, vector<32x1xf32>,
    } else {
    }
    %c0 = arith.constant 0 : index
    %c0_1 = arith.constant 0 : index
    %3 = vector.load %arg2[%c0, %c0_1] : memref<32x128xf32, #tpu.memory_space<vmem>>, vector<32x128xf32>
    %c0_2 = arith.constant 0 : index
    %c0_3 = arith.constant 0 : index
    %4 = vector.load %arg3[%c0_2, %c0_3] : memref<32x128xi8, #tpu.memory_space<vmem>>, vector<32x128xi8>
    %5 = arith.extsi %4 : vector<32x128xi8> to vector<32x128xi32>
    %6 = tpu.iota {dimensions = array<i32: 1>} : vector<32x128xi32>
    %c3_i32 = arith.constant 3 : i32
    %7 = vector.broadcast %c3_i32 : i32 to vector<32x128xi32>
    %8 = arith.andi %6, %7 : vector<32x128xi32>
    %9 = arith.cmpi sgt, %5, %8 : vector<32x128xi32>
    %10 = arith.extui %9 : vector<32x128xi1> to vector<32x128xi32>
    %11 = arith.sitofp %10 : vector<32x128xi32> to vector<32x128xf32>
    %cst = arith.constant 0.000000e+00 : f32
    %12 = vector.broadcast %cst : f32 to vector<32x128xf32>
    %13 = arith.maximumf %3, %12 : vector<32x128xf32>
    %14 = arith.mulf %3, %11 : vector<32x128xf32>
    %15 = arith.subf %13, %14 : vector<32x128xf32>
    %16 = math.absf %3 : vector<32x128xf32>
    %cst_4 = arith.constant 0.000000e+00 : f32
    %17 = vector.broadcast %cst_4 : f32 to vector<32x128xf32>
    %18 = arith.subf %17, %16 : vector<32x128xf32>
    %19 = math.exp %18 : vector<32x128xf32>
    %20 = math.log1p %19 : vector<32x128xf32>
    %21 = arith.addf %15, %20 : vector<32x128xf32>
    %cst_5 = arith.constant 1.000000e+02 : f32
    %22 = vector.broadcast %cst_5 : f32 to vector<32x128xf32>
    %23 = arith.minimumf %21, %22 : vector<32x128xf32>
    %c0_6 = arith.constant 0 : index
    %c0_7 = arith.constant 0 : index
    %24 = vector.load %arg4[%c0_6, %c0_7] : memref<32x1xf32, #tpu.memory_space<vmem>>, vector<32x1xf32>
    %cst_8 = arith.constant dense<0.000000e+00> : vector<32xf32>
    %25 = vector.multi_reduction <add>, %23, %cst_8 [1] : vector<32x128xf32> to vector<32xf32>
    %26 = vector.shape_cast %25 : vector<32xf32> to vector<32x1xf32>
    %27 = arith.addf %24, %26 : vector<32x1xf32>
    %c0_9 = arith.constant 0 : index
    %c0_10 = arith.constant 0 : index
    %28 = vector.load %arg4[%c0_9, %c0_10] : memref<32x1xf32, #tpu.memory_space<vmem>>, vector<32x1xf32>
    tpu.vector_store %arg4[%c0_9, %c0_10], %27 {strides = array<i32>} : memref<32x1xf32, #tpu.memory_space<vmem>>, vector<32x1xf32>,
    return
  }
  func.func @transform_0(%arg0: i32, %arg1: i32) -> (i32, i32) {
    %c1_i32 = arith.constant 1 : i32
    %0 = arith.muli %arg0, %c1_i32 : i32
    %1 = arith.addi %0, %arg1 : i32
    %c0_i32 = arith.constant 0 : i32
    %c0_i32_0 = arith.constant 0 : i32
    return %1, %c0_i32 : i32, i32
  }
  func.func @transform_1(%arg0: i32, %arg1: i32) -> (i32, i32) {
    %c1_i32 = arith.constant 1 : i32
    %0 = arith.muli %arg0, %c1_i32 : i32
    %1 = arith.addi %0, %arg1 : i32
    %c0_i32 = arith.constant 0 : i32
    %c0_i32_0 = arith.constant 0 : i32
    return %1, %c0_i32 : i32, i32
  }
  func.func @transform_2(%arg0: i32, %arg1: i32) -> (i32, i32) {
    %c0_i32 = arith.constant 0 : i32
    %c0_i32_0 = arith.constant 0 : i32
    return %arg0, %c0_i32 : i32, i32
  }
}

</mosaic_0001>

<bundles_post_ra>
// kernel: tpu_custom_call.1
= control target key start
LH: loop header
LB: loop body
LE: loop exit
PB: predicated region body
PF: predicated region fallthrough
CT: control target
= control target key end

     0   :  { %7 = vsyncpa [#allocation3], 0  ;;  %s356_s0 = inlined_call_operand.hbm [shape: f32[32,128], index: 0, kind: input, shape index: {}]   ;;  %s357_s1 = inlined_call_operand.hbm [shape: s8[32,128], index: 1, kind: input, shape index: {}]   ;;  %s358_s2 = inlined_call_operand.vmem [shape: f32[32,1], index: 2, kind: output, shape index: {}]  }
   0x1   :  { %s17_s11 = sshll.u32 %s356_s0, 4  ;;  %s18_s11 = int_to_ptr.hbm [resolvable:$true] %s17_s11 }
   0x2   :  { %8 = vsyncpa [#allocation5], 0  ;;  %s260_s12 = smov [#allocation2]   ;;  %s34_s16 = sshll.u32 %s357_s1, 4  ;;  %s35_s16 = int_to_ptr.hbm [resolvable:$true] %s34_s16 }
   0x3   :  { %s19_s13 = sshll.u32 %s260_s12, 4  ;;  %s261_s17 = smov 128   ;;  %s20_s13 = int_to_ptr.vmem [resolvable:$true] %s19_s13 }
   0x4   :  { %s262_s18 = smov 8   ;;  %s263_s19 = smov [#allocation4]  }
   0x5   :  { %25 = dma.hbm_to_vmem [thread:$0]  %s18_s11, 512, %s20_s13, [#allocation3], %s261_s17, %s261_s17, %s262_s18  }
   0x6   :  { %s36_s20 = sshll.u32 %s263_s19, 4  ;;  %s37_s20 = int_to_ptr.vmem [resolvable:$true] %s36_s20 }
   0x7   :  { %39 = dma.hbm_to_vmem [thread:$0]  %s35_s16, 128, %s37_s20, [#allocation5]  }
   0x8   :  { %256 = dma.done.wait [#allocation3], 512  }
   0x9   :  { %257 = vsyncadd [#allocation3], 4294966784 }
   0xa   :  { %258 = dma.done.wait [#allocation5], 128  }
   0xb   :  { %259 = vsyncadd [#allocation5], 4294967168  ;;  %v69_v0 = vlaneseq  ;;  %v286_v1 = vld [vmem:[#allocation2 + $0x10] sm:$0xff]  ;;  %v288_v2 = vld [vmem:[#allocation2] sm:$0xff]  ;;  %vm55_vm0 = vcmask 7168   ;;  %v264_v21 = vmov 0.0  }
   0xc   :  { %v98_v3 = vand.u32 2147483647, %v286_v1  ;;  %v291_v4 = vld [vmem:[#allocation2 + $0x18] sm:$0xff]  ;;  %v96_v6 = vand.u32 2147483647, %v288_v2  ;;  %v64_v7 = vld [vmem:[#allocation4] sm:$0xff] }
   0xd   :  { %v70_v5 = vand.u32 127, %v69_v0  ;;  %v99_v9 = vand.u32 2147483647, %v291_v4  ;;  %v67_v12 = vunpack.c.2.s8 %v64_v7  ;;  %v295_v16 = vld [vmem:[#allocation2 + $0x8] sm:$0xff]  ;;  %v65_v18 = vunpack.c.0.s8 %v64_v7  ;;  %58 = vst.msk [vmem:[%s358_s2 + $0x10] sm:$0xff] %vm55_vm0, %v264_v21 }
   0xe   :  { %v102_v8 = vsub.f32 0.0, %v98_v3  ;;  %v100_v10 = vsub.f32 0.0, %v96_v6  ;;  %v97_v19 = vand.u32 2147483647, %v295_v16  ;;  %v68_v20 = vunpack.c.3.s8 %v64_v7  ;;  %56 = vst.msk [vmem:[%s358_s2] sm:$0xff] %vm55_vm0, %v264_v21 }
   0xf   :  { %v71_v13 = vand.u32 3, %v70_v5  ;;  %v103_v15 = vsub.f32 0.0, %v99_v9  ;;  %57 = vst.msk [vmem:[%s358_s2 + $0x8] sm:$0xff] %vm55_vm0, %v264_v21  ;;  %v66_v29 = vunpack.c.1.s8 %v64_v7  ;;  %v86_v33 = vmax.f32 %v286_v1, 0.0 }
  0x10   :  { %v108_v11 = vmul.f32 1.442695, %v102_v8  ;;  %v104_v14 = vmul.f32 1.442695, %v100_v10  ;;  %v101_v22 = vsub.f32 0.0, %v97_v19  ;;  %59 = vst.msk [vmem:[%s358_s2 + $0x18] sm:$0xff] %vm55_vm0, %v264_v21 }
  0x11   :  { %v110_v17 = vmul.f32 1.442695, %v103_v15  ;;  %vm74_vm1 = vcmp.gt.s32.totalorder %v67_v12, %v71_v13  ;;  %vm72_vm2 = vcmp.gt.s32.totalorder %v65_v18, %v71_v13  ;;  %vm75_vm3 = vcmp.gt.s32.totalorder %v68_v20, %v71_v13 }
  0x12   :  { %192 = vpow2.f32 %v108_v11  ;;  %v185_v24 = vsel %vm74_vm1, 1.0, %v264_v21  ;;  %v106_v25 = vmul.f32 1.442695, %v101_v22  ;;  %v183_v35 = vsel %vm72_vm2, 1.0, %v264_v21 }
  0x13   :  { %194 = vpow2.f32 %v104_v14  ;;  %v90_v34 = vmul.f32 %v185_v24, %v286_v1  ;;  %v186_v37 = vsel %vm75_vm3, 1.0, %v264_v21  ;;  %vm73_vm4 = vcmp.gt.s32.totalorder %v66_v29, %v71_v13 }
  0x14   :  { %196 = vpow2.f32 %v110_v17  ;;  %v84_v42 = vmax.f32 %v288_v2, 0.0  ;;  %v88_v43 = vmul.f32 %v183_v35, %v288_v2  ;;  %v87_v45 = vmax.f32 %v291_v4, 0.0  ;;  %v158_v22 = vld [vmem:[%s358_s2 + $0x10] sm:$0xff] }
  0x15   :  { %198 = vpow2.f32 %v106_v25  ;;  %v91_v46 = vmul.f32 %v186_v37, %v291_v4  ;;  %v94_v49 = vsub.f32 %v86_v33, %v90_v34  ;;  %v184_v52 = vsel %vm73_vm4, 1.0, %v264_v21 }
  0x16   :  { %v92_v60 = vsub.f32 %v84_v42, %v88_v43  ;;  %v85_v61 = vmax.f32 %v295_v16, 0.0  ;;  %v89_v3 = vmul.f32 %v184_v52, %v295_v16  ;;  %v157_v29 = vld [vmem:[%s358_s2 + $0x8] sm:$0xff] }
  0x17   :  { %v95_v63 = vsub.f32 %v87_v45, %v91_v46 }
  0x18   :  { %v193_v23 = vpop.eup %192  ;;  %v93_v17 = vsub.f32 %v85_v61, %v89_v3 }
  0x19   :  { %v195_v26 = vpop.eup %194  ;;  %v130_v27 = vadd.f32 1.0, %v193_v23  ;;  %v133_v28 = vmul.f32 -0.5, %v193_v23  ;;  %v136_v39 = vand.u32 2147483647, %v193_v23 }
  0x1a   :  { %v112_v30 = vadd.f32 1.0, %v195_v26  ;;  %v115_v31 = vmul.f32 -0.5, %v195_v26  ;;  %v197_v32 = vpop.eup %196  ;;  %v118_v44 = vand.u32 2147483647, %v195_v26 }
  0x1b   :  { %200 = vlog2.f32 %v130_v27  ;;  %v134_v36 = vadd.f32 1.0, %v133_v28  ;;  %v139_v38 = vadd.f32 1.0, %v197_v32  ;;  %v142_v41 = vmul.f32 -0.5, %v197_v32  ;;  %v199_v48 = vpop.eup %198  ;;  %v159_v28 = vld [vmem:[%s358_s2 + $0x18] sm:$0xff] }
  0x1c   :  { %202 = vlog2.f32 %v112_v30  ;;  %v116_v40 = vadd.f32 1.0, %v115_v31  ;;  %v145_v51 = vand.u32 2147483647, %v197_v32  ;;  %vm320_vm5 = vcmp.lt.f32.partialorder %v136_v39, 0.0004427343 }
  0x1d   :  { %204 = vlog2.f32 %v139_v38  ;;  %v143_v47 = vadd.f32 1.0, %v142_v41  ;;  %v135_v50 = vmul.f32 %v193_v23, %v134_v36  ;;  %v121_v56 = vadd.f32 1.0, %v199_v48  ;;  %v156_v23 = vld [vmem:[%s358_s2] sm:$0xff] }
  0x1e   :  { %v117_v55 = vmul.f32 %v195_v26, %v116_v40  ;;  %v124_v57 = vmul.f32 -0.5, %v199_v48  ;;  %vm119_vm6 = vcmp.lt.f32.partialorder %v118_v44, 0.0004427343  ;;  %vm146_vm7 = vcmp.lt.f32.partialorder %v145_v51, 0.0004427343 }
  0x1f   :  { %v144_v0 = vmul.f32 %v197_v32, %v143_v47  ;;  %206 = vlog2.f32 %v121_v56  ;;  %v127_v8 = vand.u32 2147483647, %v199_v48 }
  0x20   :  { %v125_v4 = vadd.f32 1.0, %v124_v57 }
  0x21   :  { %v201_v53 = vpop.eup %200  ;;  %vm128_vm8 = vcmp.lt.f32.partialorder %v127_v8, 0.0004427343 }
  0x22   :  { %v203_v58 = vpop.eup %202  ;;  %v132_v59 = vmul.f32 0.6931472, %v201_v53  ;;  %v126_v13 = vmul.f32 %v199_v48, %v125_v4 }
  0x23   :  { %v114_v62 = vmul.f32 0.6931472, %v203_v58  ;;  %v205_v1 = vpop.eup %204 }
  0x24   :  { %v138_v2 = vsel %vm320_vm5, %v135_v50, %v132_v59  ;;  %v141_v7 = vmul.f32 0.6931472, %v205_v1 }
  0x25   :  { %v150_v5 = vadd.f32 %v138_v2, %v94_v49  ;;  %v120_v6 = vsel %vm119_vm6, %v117_v55, %v114_v62  ;;  %v207_v14 = vpop.eup %206 }
  0x26   :  { %v148_v9 = vadd.f32 %v120_v6, %v92_v60  ;;  %v147_v11 = vsel %vm146_vm7, %v144_v0, %v141_v7  ;;  %v123_v18 = vmul.f32 0.6931472, %v207_v14 }
  0x27   :  { %v154_v10 = vmin.f32 %v150_v5, 100.0  ;;  %v151_v15 = vadd.f32 %v147_v11, %v95_v63 }
  0x28   :  { %v152_v12 = vmin.f32 %v148_v9, 100.0  ;;  %v129_v19 = vsel %vm128_vm8, %v126_v13, %v123_v18 }
  0x29   :  { %164 = vadd.xlane.f32.xlu1 %v154_v10  ;;  %v155_v20 = vmin.f32 %v151_v15, 100.0  ;;  %v149_v16 = vadd.f32 %v129_v19, %v93_v17 }
  0x2a   :  { %160 = vadd.xlane.f32.xlu0 %v152_v12 }
  0x2b   :  { %v153_v21 = vmin.f32 %v149_v16, 100.0 }
  0x31   :  { %166 = vadd.xlane.f32.xlu1 %v155_v20 }
  0x32   :  { %162 = vadd.xlane.f32.xlu0 %v153_v21 }
  0x9c   :  { %v165_v24 = vpop.xlane.xlu1 %164 }
  0x9d   :  { %v170_v25 = vadd.f32 %v165_v24, %v158_v22  ;;  %v161_v26 = vpop.xlane.xlu0 %160 }
  0x9e   :  { %v168_v27 = vadd.f32 %v161_v26, %v156_v23 }
  0x9f   :  { %175 = vst.msk [vmem:[%s358_s2 + $0x10] sm:$0xff] %vm55_vm0, %v170_v25 }
  0xa0   :  { %173 = vst.msk [vmem:[%s358_s2] sm:$0xff] %vm55_vm0, %v168_v27 }
  0xa4   :  { %v167_v30 = vpop.xlane.xlu1 %166 }
  0xa5   :  { %v171_v31 = vadd.f32 %v167_v30, %v159_v28  ;;  %v163_v32 = vpop.xlane.xlu0 %162 }
  0xa6   :  { %v169_v33 = vadd.f32 %v163_v32, %v157_v29 }
  0xa7   :  { %176 = vst.msk [vmem:[%s358_s2 + $0x18] sm:$0xff] %vm55_vm0, %v171_v31 }
  0xa8   :  { %174 = vst.msk [vmem:[%s358_s2 + $0x8] sm:$0xff] %vm55_vm0, %v169_v33 }
  0xa9   :  { %181 = vsyncpa [#allocation3], 1 }
  0xaa   :  { %182 = vsyncpa [#allocation5], 1 }

</bundles_post_ra>
